<compile_context>
chip_gen: v6e
topology: v6e:2x2x1
jax: 0.10.0
libtpu: 0.0.40
codegen_flags: <defaults>
</compile_context>

<pallas_src>
import jax
import jax.numpy as jnp
from jax import lax
from jax.experimental import pallas as pl
from jax.experimental.pallas import tpu as pltpu

# ---- small config consistent with the module -----------------------------------
BS = 2                     # batch
N_CHANNS = 8               # n_channs (one sublane tile high)
T = 256                    # time samples (lane-dense: multiple of 128)
N_TIMEFILTERS = 4
TIMEFILTERLEN = 5          # odd -> "same" output time length
PAD = (TIMEFILTERLEN - 1) // 2
F32 = jnp.float32

assert T % 128 == 0 and N_CHANNS % 8 == 0
assert TIMEFILTERLEN < T   # guards the roll-shift edge-mask construction


# ----------------------------- Pallas kernel -------------------------------------
def timeconv_kernel(x_ref, w_ref, b_ref, o_ref):
    # x_ref: (B, 1, C, T) VMEM ; w_ref: (nF*K,) SMEM ; b_ref: (nF,) SMEM
    # o_ref: (B, nF, C, T) VMEM
    #
    # Edge masks for the wrapped columns of each rolled tap: built once
    # (one iota + K-1 compares) and shared by both batches and all filters.
    col = lax.broadcasted_iota(jnp.int32, (N_CHANNS, T), 1)
    masks = []
    for k in range(TIMEFILTERLEN):
        if k < PAD:
            masks.append(col >= (PAD - k))        # left edge wrapped -> zero
        elif k > PAD:
            masks.append(col < T - (k - PAD))     # right edge wrapped -> zero
        else:
            masks.append(None)                    # centre tap: no wrap

    for b in range(BS):                           # static (BS == 2)
        x = x_ref[b, 0]                           # (C, T)

        # K shifted taps, built once and shared by all output filters.
        taps = []
        for k in range(TIMEFILTERLEN):
            s = (PAD - k) % T                     # static non-negative lane shift
            xs = x if s == 0 else pltpu.roll(x, shift=s, axis=1)   # XLU slot
            if masks[k] is not None:
                xs = jnp.where(masks[k], xs, 0.0)                  # VPU select
            taps.append(xs)

        for f in range(N_TIMEFILTERS):
            acc = w_ref[f * TIMEFILTERLEN] * taps[0]
            for k in range(1, TIMEFILTERLEN):
                acc = acc + w_ref[f * TIMEFILTERLEN + k] * taps[k]
            # bias added once at the store; (8, 256) lane-dense unmasked vst
            o_ref[b, f] = acc + b_ref[f]


# ----------------------------- wrapper --------------------------------------------
def conv_att_timefilter_forward(x_nchw, w, b):
    # x_nchw: (B, 1, C, T) PyTorch NCHW ; w: (nF, K) ; b: (nF,)
    assert x_nchw.shape == (BS, 1, N_CHANNS, T), x_nchw.shape
    assert w.shape == (N_TIMEFILTERS, TIMEFILTERLEN), w.shape
    assert b.shape == (N_TIMEFILTERS,), b.shape

    bytes_accessed = 4 * (BS * N_CHANNS * T                        # input
                          + BS * N_TIMEFILTERS * N_CHANNS * T      # output
                          + N_TIMEFILTERS * (TIMEFILTERLEN + 1))   # weights + bias
    return pl.pallas_call(
        timeconv_kernel,
        out_shape=jax.ShapeDtypeStruct((BS, N_TIMEFILTERS, N_CHANNS, T), F32),
        # Single invocation (no grid): everything trivially fits VMEM.
        in_specs=[
            pl.BlockSpec(memory_space=pltpu.MemorySpace.VMEM),   # whole input in VMEM
            pl.BlockSpec(memory_space=pltpu.MemorySpace.SMEM),   # filter weights
            pl.BlockSpec(memory_space=pltpu.MemorySpace.SMEM),   # bias
        ],
        out_specs=pl.BlockSpec(memory_space=pltpu.MemorySpace.VMEM),
        cost_estimate=pl.CostEstimate(
            flops=2 * BS * N_TIMEFILTERS * N_CHANNS * T * TIMEFILTERLEN,
            transcendentals=0,
            bytes_accessed=bytes_accessed),
    )(x_nchw, w.reshape(-1), b)


# ----------------------------- pure-JAX reference ---------------------------------
def timeconv_reference(x_nchw, w, b):
    # PyTorch Conv2d(1, nF, (1, K), padding=(0, PAD)) is cross-correlation:
    # out[b,f,c,t] = bias[f] + sum_k w[f,k] * x[b,0,c,t+k-PAD]  (zero padded)
    x = x_nchw[:, 0, :, :]
    xp = jnp.pad(x, ((0, 0), (0, 0), (PAD, PAD)))
    out = jnp.zeros((BS, N_TIMEFILTERS, N_CHANNS, T), F32)
    for k in range(TIMEFILTERLEN):
        out = out + w[None, :, None, None, k] * xp[:, None, :, k:k + T]
    return out + b[None, :, None, None]


# ----------------------------- main ------------------------------------------------
if __name__ == "__main__":
    key = jax.random.PRNGKey(0)
    kx, kw, kb = jax.random.split(key, 3)
    x = jax.random.normal(kx, (BS, 1, N_CHANNS, T), F32)
    w = 0.3 * jax.random.normal(kw, (N_TIMEFILTERS, TIMEFILTERLEN), F32)
    b = 0.05 * jax.random.normal(kb, (N_TIMEFILTERS,), F32)

    fwd = jax.jit(conv_att_timefilter_forward)
    out = fwd(x, w, b)
    jax.block_until_ready(out)

    assert out.shape == (BS, N_TIMEFILTERS, N_CHANNS, T), out.shape
    assert bool(jnp.all(jnp.isfinite(out)))
    ref = timeconv_reference(x, w, b)
    err = float(jnp.max(jnp.abs(out - ref)))
    assert err < 1e-4, err
    print("KERNEL_OK")
</pallas_src>

<mosaic_0001>
module attributes {stable_mosaic.version = 11 : i64} {
  func.func @timeconv_kernel(%arg0: memref<2x1x8x256xf32, #tpu.memory_space<vmem>>, %arg1: memref<20xf32, #tpu.memory_space<smem>>, %arg2: memref<4xf32, #tpu.memory_space<smem>>, %arg3: memref<2x4x8x256xf32, #tpu.memory_space<vmem>>) attributes {dimension_semantics = [], scalar_prefetch = 0 : i64, scratch_operands = 0 : i64, tpu.core_type = #tpu.core_type<tc>} {
    %0 = tpu.iota {dimensions = array<i32: 1>} : vector<8x256xi32>
    %c2_i32 = arith.constant 2 : i32
    %1 = vector.broadcast %c2_i32 : i32 to vector<8x256xi32>
    %2 = arith.cmpi sge, %0, %1 : vector<8x256xi32>
    %c1_i32 = arith.constant 1 : i32
    %3 = vector.broadcast %c1_i32 : i32 to vector<8x256xi32>
    %4 = arith.cmpi sge, %0, %3 : vector<8x256xi32>
    %c255_i32 = arith.constant 255 : i32
    %5 = vector.broadcast %c255_i32 : i32 to vector<8x256xi32>
    %6 = arith.cmpi slt, %0, %5 : vector<8x256xi32>
    %c254_i32 = arith.constant 254 : i32
    %7 = vector.broadcast %c254_i32 : i32 to vector<8x256xi32>
    %8 = arith.cmpi slt, %0, %7 : vector<8x256xi32>
    %c0 = arith.constant 0 : index
    %c0_0 = arith.constant 0 : index
    %c0_1 = arith.constant 0 : index
    %c0_2 = arith.constant 0 : index
    %9 = vector.load %arg0[%c0, %c0_0, %c0_1, %c0_2] : memref<2x1x8x256xf32, #tpu.memory_space<vmem>>, vector<1x1x8x256xf32>
    %10 = vector.shape_cast %9 : vector<1x1x8x256xf32> to vector<8x256xf32>
    %c2_i32_3 = arith.constant 2 : i32
    %11 = tpu.dynamic_rotate %10 by %c2_i32_3 dim 1 : vector<8x256xf32>, i32 -> vector<8x256xf32>
    %cst = arith.constant 0.000000e+00 : f32
    %12 = vector.broadcast %cst : f32 to vector<8x256xf32>
    %13 = arith.select %2, %11, %12 : vector<8x256xi1>, vector<8x256xf32>
    %c1_i32_4 = arith.constant 1 : i32
    %14 = tpu.dynamic_rotate %10 by %c1_i32_4 dim 1 : vector<8x256xf32>, i32 -> vector<8x256xf32>
    %cst_5 = arith.constant 0.000000e+00 : f32
    %15 = vector.broadcast %cst_5 : f32 to vector<8x256xf32>
    %16 = arith.select %4, %14, %15 : vector<8x256xi1>, vector<8x256xf32>
    %c255_i32_6 = arith.constant 255 : i32
    %17 = tpu.dynamic_rotate %10 by %c255_i32_6 dim 1 : vector<8x256xf32>, i32 -> vector<8x256xf32>
    %cst_7 = arith.constant 0.000000e+00 : f32
    %18 = vector.broadcast %cst_7 : f32 to vector<8x256xf32>
    %19 = arith.select %6, %17, %18 : vector<8x256xi1>, vector<8x256xf32>
    %c254_i32_8 = arith.constant 254 : i32
    %20 = tpu.dynamic_rotate %10 by %c254_i32_8 dim 1 : vector<8x256xf32>, i32 -> vector<8x256xf32>
    %cst_9 = arith.constant 0.000000e+00 : f32
    %21 = vector.broadcast %cst_9 : f32 to vector<8x256xf32>
    %22 = arith.select %8, %20, %21 : vector<8x256xi1>, vector<8x256xf32>
    %c0_10 = arith.constant 0 : index
    %23 = memref.load %arg1[%c0_10] : memref<20xf32, #tpu.memory_space<smem>>
    %24 = vector.broadcast %23 : f32 to vector<8x256xf32>
    %25 = arith.mulf %24, %13 : vector<8x256xf32>
    %c1 = arith.constant 1 : index
    %26 = memref.load %arg1[%c1] : memref<20xf32, #tpu.memory_space<smem>>
    %27 = vector.broadcast %26 : f32 to vector<8x256xf32>
    %28 = arith.mulf %27, %16 : vector<8x256xf32>
    %29 = arith.addf %25, %28 : vector<8x256xf32>
    %c2 = arith.constant 2 : index
    %30 = memref.load %arg1[%c2] : memref<20xf32, #tpu.memory_space<smem>>
    %31 = vector.broadcast %30 : f32 to vector<8x256xf32>
    %32 = arith.mulf %31, %10 : vector<8x256xf32>
    %33 = arith.addf %29, %32 : vector<8x256xf32>
    %c3 = arith.constant 3 : index
    %34 = memref.load %arg1[%c3] : memref<20xf32, #tpu.memory_space<smem>>
    %35 = vector.broadcast %34 : f32 to vector<8x256xf32>
    %36 = arith.mulf %35, %19 : vector<8x256xf32>
    %37 = arith.addf %33, %36 : vector<8x256xf32>
    %c4 = arith.constant 4 : index
    %38 = memref.load %arg1[%c4] : memref<20xf32, #tpu.memory_space<smem>>
    %39 = vector.broadcast %38 : f32 to vector<8x256xf32>
    %40 = arith.mulf %39, %22 : vector<8x256xf32>
    %41 = arith.addf %37, %40 : vector<8x256xf32>
    %c0_11 = arith.constant 0 : index
    %42 = memref.load %arg2[%c0_11] : memref<4xf32, #tpu.memory_space<smem>>
    %43 = vector.broadcast %42 : f32 to vector<8x256xf32>
    %44 = arith.addf %41, %43 : vector<8x256xf32>
    %c0_12 = arith.constant 0 : index
    %c0_13 = arith.constant 0 : index
    %c0_14 = arith.constant 0 : index
    %c0_15 = arith.constant 0 : index
    %45 = vector.load %arg3[%c0_12, %c0_13, %c0_14, %c0_15] : memref<2x4x8x256xf32, #tpu.memory_space<vmem>>, vector<1x1x8x256xf32>
    %46 = vector.shape_cast %45 : vector<1x1x8x256xf32> to vector<8x256xf32>
    %47 = vector.shape_cast %44 : vector<8x256xf32> to vector<1x1x8x256xf32>
    tpu.vector_store %arg3[%c0_12, %c0_13, %c0_14, %c0_15], %47 {strides = array<i32>} : memref<2x4x8x256xf32, #tpu.memory_space<vmem>>, vector<1x1x8x256xf32>,
    %c5 = arith.constant 5 : index
    %48 = memref.load %arg1[%c5] : memref<20xf32, #tpu.memory_space<smem>>
    %49 = vector.broadcast %48 : f32 to vector<8x256xf32>
    %50 = arith.mulf %49, %13 : vector<8x256xf32>
    %c6 = arith.constant 6 : index
    %51 = memref.load %arg1[%c6] : memref<20xf32, #tpu.memory_space<smem>>
    %52 = vector.broadcast %51 : f32 to vector<8x256xf32>
    %53 = arith.mulf %52, %16 : vector<8x256xf32>
    %54 = arith.addf %50, %53 : vector<8x256xf32>
    %c7 = arith.constant 7 : index
    %55 = memref.load %arg1[%c7] : memref<20xf32, #tpu.memory_space<smem>>
    %56 = vector.broadcast %55 : f32 to vector<8x256xf32>
    %57 = arith.mulf %56, %10 : vector<8x256xf32>
    %58 = arith.addf %54, %57 : vector<8x256xf32>
    %c8 = arith.constant 8 : index
    %59 = memref.load %arg1[%c8] : memref<20xf32, #tpu.memory_space<smem>>
    %60 = vector.broadcast %59 : f32 to vector<8x256xf32>
    %61 = arith.mulf %60, %19 : vector<8x256xf32>
    %62 = arith.addf %58, %61 : vector<8x256xf32>
    %c9 = arith.constant 9 : index
    %63 = memref.load %arg1[%c9] : memref<20xf32, #tpu.memory_space<smem>>
    %64 = vector.broadcast %63 : f32 to vector<8x256xf32>
    %65 = arith.mulf %64, %22 : vector<8x256xf32>
    %66 = arith.addf %62, %65 : vector<8x256xf32>
    %c1_16 = arith.constant 1 : index
    %67 = memref.load %arg2[%c1_16] : memref<4xf32, #tpu.memory_space<smem>>
    %68 = vector.broadcast %67 : f32 to vector<8x256xf32>
    %69 = arith.addf %66, %68 : vector<8x256xf32>
    %c0_17 = arith.constant 0 : index
    %c1_18 = arith.constant 1 : index
    %c0_19 = arith.constant 0 : index
    %c0_20 = arith.constant 0 : index
    %70 = vector.load %arg3[%c0_17, %c1_18, %c0_19, %c0_20] : memref<2x4x8x256xf32, #tpu.memory_space<vmem>>, vector<1x1x8x256xf32>
    %71 = vector.shape_cast %70 : vector<1x1x8x256xf32> to vector<8x256xf32>
    %72 = vector.shape_cast %69 : vector<8x256xf32> to vector<1x1x8x256xf32>
    tpu.vector_store %arg3[%c0_17, %c1_18, %c0_19, %c0_20], %72 {strides = array<i32>} : memref<2x4x8x256xf32, #tpu.memory_space<vmem>>, vector<1x1x8x256xf32>,
    %c10 = arith.constant 10 : index
    %73 = memref.load %arg1[%c10] : memref<20xf32, #tpu.memory_space<smem>>
    %74 = vector.broadcast %73 : f32 to vector<8x256xf32>
    %75 = arith.mulf %74, %13 : vector<8x256xf32>
    %c11 = arith.constant 11 : index
    %76 = memref.load %arg1[%c11] : memref<20xf32, #tpu.memory_space<smem>>
    %77 = vector.broadcast %76 : f32 to vector<8x256xf32>
    %78 = arith.mulf %77, %16 : vector<8x256xf32>
    %79 = arith.addf %75, %78 : vector<8x256xf32>
    %c12 = arith.constant 12 : index
    %80 = memref.load %arg1[%c12] : memref<20xf32, #tpu.memory_space<smem>>
    %81 = vector.broadcast %80 : f32 to vector<8x256xf32>
    %82 = arith.mulf %81, %10 : vector<8x256xf32>
    %83 = arith.addf %79, %82 : vector<8x256xf32>
    %c13 = arith.constant 13 : index
    %84 = memref.load %arg1[%c13] : memref<20xf32, #tpu.memory_space<smem>>
    %85 = vector.broadcast %84 : f32 to vector<8x256xf32>
    %86 = arith.mulf %85, %19 : vector<8x256xf32>
    %87 = arith.addf %83, %86 : vector<8x256xf32>
    %c14 = arith.constant 14 : index
    %88 = memref.load %arg1[%c14] : memref<20xf32, #tpu.memory_space<smem>>
    %89 = vector.broadcast %88 : f32 to vector<8x256xf32>
    %90 = arith.mulf %89, %22 : vector<8x256xf32>
    %91 = arith.addf %87, %90 : vector<8x256xf32>
    %c2_21 = arith.constant 2 : index
    %92 = memref.load %arg2[%c2_21] : memref<4xf32, #tpu.memory_space<smem>>
    %93 = vector.broadcast %92 : f32 to vector<8x256xf32>
    %94 = arith.addf %91, %93 : vector<8x256xf32>
    %c0_22 = arith.constant 0 : index
    %c2_23 = arith.constant 2 : index
    %c0_24 = arith.constant 0 : index
    %c0_25 = arith.constant 0 : index
    %95 = vector.load %arg3[%c0_22, %c2_23, %c0_24, %c0_25] : memref<2x4x8x256xf32, #tpu.memory_space<vmem>>, vector<1x1x8x256xf32>
    %96 = vector.shape_cast %95 : vector<1x1x8x256xf32> to vector<8x256xf32>
    %97 = vector.shape_cast %94 : vector<8x256xf32> to vector<1x1x8x256xf32>
    tpu.vector_store %arg3[%c0_22, %c2_23, %c0_24, %c0_25], %97 {strides = array<i32>} : memref<2x4x8x256xf32, #tpu.memory_space<vmem>>, vector<1x1x8x256xf32>,
    %c15 = arith.constant 15 : index
    %98 = memref.load %arg1[%c15] : memref<20xf32, #tpu.memory_space<smem>>
    %99 = vector.broadcast %98 : f32 to vector<8x256xf32>
    %100 = arith.mulf %99, %13 : vector<8x256xf32>
    %c16 = arith.constant 16 : index
    %101 = memref.load %arg1[%c16] : memref<20xf32, #tpu.memory_space<smem>>
    %102 = vector.broadcast %101 : f32 to vector<8x256xf32>
    %103 = arith.mulf %102, %16 : vector<8x256xf32>
    %104 = arith.addf %100, %103 : vector<8x256xf32>
    %c17 = arith.constant 17 : index
    %105 = memref.load %arg1[%c17] : memref<20xf32, #tpu.memory_space<smem>>
    %106 = vector.broadcast %105 : f32 to vector<8x256xf32>
    %107 = arith.mulf %106, %10 : vector<8x256xf32>
    %108 = arith.addf %104, %107 : vector<8x256xf32>
    %c18 = arith.constant 18 : index
    %109 = memref.load %arg1[%c18] : memref<20xf32, #tpu.memory_space<smem>>
    %110 = vector.broadcast %109 : f32 to vector<8x256xf32>
    %111 = arith.mulf %110, %19 : vector<8x256xf32>
    %112 = arith.addf %108, %111 : vector<8x256xf32>
    %c19 = arith.constant 19 : index
    %113 = memref.load %arg1[%c19] : memref<20xf32, #tpu.memory_space<smem>>
    %114 = vector.broadcast %113 : f32 to vector<8x256xf32>
    %115 = arith.mulf %114, %22 : vector<8x256xf32>
    %116 = arith.addf %112, %115 : vector<8x256xf32>
    %c3_26 = arith.constant 3 : index
    %117 = memref.load %arg2[%c3_26] : memref<4xf32, #tpu.memory_space<smem>>
    %118 = vector.broadcast %117 : f32 to vector<8x256xf32>
    %119 = arith.addf %116, %118 : vector<8x256xf32>
    %c0_27 = arith.constant 0 : index
    %c3_28 = arith.constant 3 : index
    %c0_29 = arith.constant 0 : index
    %c0_30 = arith.constant 0 : index
    %120 = vector.load %arg3[%c0_27, %c3_28, %c0_29, %c0_30] : memref<2x4x8x256xf32, #tpu.memory_space<vmem>>, vector<1x1x8x256xf32>
    %121 = vector.shape_cast %120 : vector<1x1x8x256xf32> to vector<8x256xf32>
    %122 = vector.shape_cast %119 : vector<8x256xf32> to vector<1x1x8x256xf32>
    tpu.vector_store %arg3[%c0_27, %c3_28, %c0_29, %c0_30], %122 {strides = array<i32>} : memref<2x4x8x256xf32, #tpu.memory_space<vmem>>, vector<1x1x8x256xf32>,
    %c1_31 = arith.constant 1 : index
    %c0_32 = arith.constant 0 : index
    %c0_33 = arith.constant 0 : index
    %c0_34 = arith.constant 0 : index
    %123 = vector.load %arg0[%c1_31, %c0_32, %c0_33, %c0_34] : memref<2x1x8x256xf32, #tpu.memory_space<vmem>>, vector<1x1x8x256xf32>
    %124 = vector.shape_cast %123 : vector<1x1x8x256xf32> to vector<8x256xf32>
    %c2_i32_35 = arith.constant 2 : i32
    %125 = tpu.dynamic_rotate %124 by %c2_i32_35 dim 1 : vector<8x256xf32>, i32 -> vector<8x256xf32>
    %cst_36 = arith.constant 0.000000e+00 : f32
    %126 = vector.broadcast %cst_36 : f32 to vector<8x256xf32>
    %127 = arith.select %2, %125, %126 : vector<8x256xi1>, vector<8x256xf32>
    %c1_i32_37 = arith.constant 1 : i32
    %128 = tpu.dynamic_rotate %124 by %c1_i32_37 dim 1 : vector<8x256xf32>, i32 -> vector<8x256xf32>
    %cst_38 = arith.constant 0.000000e+00 : f32
    %129 = vector.broadcast %cst_38 : f32 to vector<8x256xf32>
    %130 = arith.select %4, %128, %129 : vector<8x256xi1>, vector<8x256xf32>
    %c255_i32_39 = arith.constant 255 : i32
    %131 = tpu.dynamic_rotate %124 by %c255_i32_39 dim 1 : vector<8x256xf32>, i32 -> vector<8x256xf32>
    %cst_40 = arith.constant 0.000000e+00 : f32
    %132 = vector.broadcast %cst_40 : f32 to vector<8x256xf32>
    %133 = arith.select %6, %131, %132 : vector<8x256xi1>, vector<8x256xf32>
    %c254_i32_41 = arith.constant 254 : i32
    %134 = tpu.dynamic_rotate %124 by %c254_i32_41 dim 1 : vector<8x256xf32>, i32 -> vector<8x256xf32>
    %cst_42 = arith.constant 0.000000e+00 : f32
    %135 = vector.broadcast %cst_42 : f32 to vector<8x256xf32>
    %136 = arith.select %8, %134, %135 : vector<8x256xi1>, vector<8x256xf32>
    %c0_43 = arith.constant 0 : index
    %137 = memref.load %arg1[%c0_43] : memref<20xf32, #tpu.memory_space<smem>>
    %138 = vector.broadcast %137 : f32 to vector<8x256xf32>
    %139 = arith.mulf %138, %127 : vector<8x256xf32>
    %c1_44 = arith.constant 1 : index
    %140 = memref.load %arg1[%c1_44] : memref<20xf32, #tpu.memory_space<smem>>
    %141 = vector.broadcast %140 : f32 to vector<8x256xf32>
    %142 = arith.mulf %141, %130 : vector<8x256xf32>
    %143 = arith.addf %139, %142 : vector<8x256xf32>
    %c2_45 = arith.constant 2 : index
    %144 = memref.load %arg1[%c2_45] : memref<20xf32, #tpu.memory_space<smem>>
    %145 = vector.broadcast %144 : f32 to vector<8x256xf32>
    %146 = arith.mulf %145, %124 : vector<8x256xf32>
    %147 = arith.addf %143, %146 : vector<8x256xf32>
    %c3_46 = arith.constant 3 : index
    %148 = memref.load %arg1[%c3_46] : memref<20xf32, #tpu.memory_space<smem>>
    %149 = vector.broadcast %148 : f32 to vector<8x256xf32>
    %150 = arith.mulf %149, %133 : vector<8x256xf32>
    %151 = arith.addf %147, %150 : vector<8x256xf32>
    %c4_47 = arith.constant 4 : index
    %152 = memref.load %arg1[%c4_47] : memref<20xf32, #tpu.memory_space<smem>>
    %153 = vector.broadcast %152 : f32 to vector<8x256xf32>
    %154 = arith.mulf %153, %136 : vector<8x256xf32>
    %155 = arith.addf %151, %154 : vector<8x256xf32>
    %c0_48 = arith.constant 0 : index
    %156 = memref.load %arg2[%c0_48] : memref<4xf32, #tpu.memory_space<smem>>
    %157 = vector.broadcast %156 : f32 to vector<8x256xf32>
    %158 = arith.addf %155, %157 : vector<8x256xf32>
    %c1_49 = arith.constant 1 : index
    %c0_50 = arith.constant 0 : index
    %c0_51 = arith.constant 0 : index
    %c0_52 = arith.constant 0 : index
    %159 = vector.load %arg3[%c1_49, %c0_50, %c0_51, %c0_52] : memref<2x4x8x256xf32, #tpu.memory_space<vmem>>, vector<1x1x8x256xf32>
    %160 = vector.shape_cast %159 : vector<1x1x8x256xf32> to vector<8x256xf32>
    %161 = vector.shape_cast %158 : vector<8x256xf32> to vector<1x1x8x256xf32>
    tpu.vector_store %arg3[%c1_49, %c0_50, %c0_51, %c0_52], %161 {strides = array<i32>} : memref<2x4x8x256xf32, #tpu.memory_space<vmem>>, vector<1x1x8x256xf32>,
    %c5_53 = arith.constant 5 : index
    %162 = memref.load %arg1[%c5_53] : memref<20xf32, #tpu.memory_space<smem>>
    %163 = vector.broadcast %162 : f32 to vector<8x256xf32>
    %164 = arith.mulf %163, %127 : vector<8x256xf32>
    %c6_54 = arith.constant 6 : index
    %165 = memref.load %arg1[%c6_54] : memref<20xf32, #tpu.memory_space<smem>>
    %166 = vector.broadcast %165 : f32 to vector<8x256xf32>
    %167 = arith.mulf %166, %130 : vector<8x256xf32>
    %168 = arith.addf %164, %167 : vector<8x256xf32>
    %c7_55 = arith.constant 7 : index
    %169 = memref.load %arg1[%c7_55] : memref<20xf32, #tpu.memory_space<smem>>
    %170 = vector.broadcast %169 : f32 to vector<8x256xf32>
    %171 = arith.mulf %170, %124 : vector<8x256xf32>
    %172 = arith.addf %168, %171 : vector<8x256xf32>
    %c8_56 = arith.constant 8 : index
    %173 = memref.load %arg1[%c8_56] : memref<20xf32, #tpu.memory_space<smem>>
    %174 = vector.broadcast %173 : f32 to vector<8x256xf32>
    %175 = arith.mulf %174, %133 : vector<8x256xf32>
    %176 = arith.addf %172, %175 : vector<8x256xf32>
    %c9_57 = arith.constant 9 : index
    %177 = memref.load %arg1[%c9_57] : memref<20xf32, #tpu.memory_space<smem>>
    %178 = vector.broadcast %177 : f32 to vector<8x256xf32>
    %179 = arith.mulf %178, %136 : vector<8x256xf32>
    %180 = arith.addf %176, %179 : vector<8x256xf32>
    %c1_58 = arith.constant 1 : index
    %181 = memref.load %arg2[%c1_58] : memref<4xf32, #tpu.memory_space<smem>>
    %182 = vector.broadcast %181 : f32 to vector<8x256xf32>
    %183 = arith.addf %180, %182 : vector<8x256xf32>
    %c1_59 = arith.constant 1 : index
    %c1_60 = arith.constant 1 : index
    %c0_61 = arith.constant 0 : index
    %c0_62 = arith.constant 0 : index
    %184 = vector.load %arg3[%c1_59, %c1_60, %c0_61, %c0_62] : memref<2x4x8x256xf32, #tpu.memory_space<vmem>>, vector<1x1x8x256xf32>
    %185 = vector.shape_cast %184 : vector<1x1x8x256xf32> to vector<8x256xf32>
    %186 = vector.shape_cast %183 : vector<8x256xf32> to vector<1x1x8x256xf32>
    tpu.vector_store %arg3[%c1_59, %c1_60, %c0_61, %c0_62], %186 {strides = array<i32>} : memref<2x4x8x256xf32, #tpu.memory_space<vmem>>, vector<1x1x8x256xf32>,
    %c10_63 = arith.constant 10 : index
    %187 = memref.load %arg1[%c10_63] : memref<20xf32, #tpu.memory_space<smem>>
    %188 = vector.broadcast %187 : f32 to vector<8x256xf32>
    %189 = arith.mulf %188, %127 : vector<8x256xf32>
    %c11_64 = arith.constant 11 : index
    %190 = memref.load %arg1[%c11_64] : memref<20xf32, #tpu.memory_space<smem>>
    %191 = vector.broadcast %190 : f32 to vector<8x256xf32>
    %192 = arith.mulf %191, %130 : vector<8x256xf32>
    %193 = arith.addf %189, %192 : vector<8x256xf32>
    %c12_65 = arith.constant 12 : index
    %194 = memref.load %arg1[%c12_65] : memref<20xf32, #tpu.memory_space<smem>>
    %195 = vector.broadcast %194 : f32 to vector<8x256xf32>
    %196 = arith.mulf %195, %124 : vector<8x256xf32>
    %197 = arith.addf %193, %196 : vector<8x256xf32>
    %c13_66 = arith.constant 13 : index
    %198 = memref.load %arg1[%c13_66] : memref<20xf32, #tpu.memory_space<smem>>
    %199 = vector.broadcast %198 : f32 to vector<8x256xf32>
    %200 = arith.mulf %199, %133 : vector<8x256xf32>
    %201 = arith.addf %197, %200 : vector<8x256xf32>
    %c14_67 = arith.constant 14 : index
    %202 = memref.load %arg1[%c14_67] : memref<20xf32, #tpu.memory_space<smem>>
    %203 = vector.broadcast %202 : f32 to vector<8x256xf32>
    %204 = arith.mulf %203, %136 : vector<8x256xf32>
    %205 = arith.addf %201, %204 : vector<8x256xf32>
    %c2_68 = arith.constant 2 : index
    %206 = memref.load %arg2[%c2_68] : memref<4xf32, #tpu.memory_space<smem>>
    %207 = vector.broadcast %206 : f32 to vector<8x256xf32>
    %208 = arith.addf %205, %207 : vector<8x256xf32>
    %c1_69 = arith.constant 1 : index
    %c2_70 = arith.constant 2 : index
    %c0_71 = arith.constant 0 : index
    %c0_72 = arith.constant 0 : index
    %209 = vector.load %arg3[%c1_69, %c2_70, %c0_71, %c0_72] : memref<2x4x8x256xf32, #tpu.memory_space<vmem>>, vector<1x1x8x256xf32>
    %210 = vector.shape_cast %209 : vector<1x1x8x256xf32> to vector<8x256xf32>
    %211 = vector.shape_cast %208 : vector<8x256xf32> to vector<1x1x8x256xf32>
    tpu.vector_store %arg3[%c1_69, %c2_70, %c0_71, %c0_72], %211 {strides = array<i32>} : memref<2x4x8x256xf32, #tpu.memory_space<vmem>>, vector<1x1x8x256xf32>,
    %c15_73 = arith.constant 15 : index
    %212 = memref.load %arg1[%c15_73] : memref<20xf32, #tpu.memory_space<smem>>
    %213 = vector.broadcast %212 : f32 to vector<8x256xf32>
    %214 = arith.mulf %213, %127 : vector<8x256xf32>
    %c16_74 = arith.constant 16 : index
    %215 = memref.load %arg1[%c16_74] : memref<20xf32, #tpu.memory_space<smem>>
    %216 = vector.broadcast %215 : f32 to vector<8x256xf32>
    %217 = arith.mulf %216, %130 : vector<8x256xf32>
    %218 = arith.addf %214, %217 : vector<8x256xf32>
    %c17_75 = arith.constant 17 : index
    %219 = memref.load %arg1[%c17_75] : memref<20xf32, #tpu.memory_space<smem>>
    %220 = vector.broadcast %219 : f32 to vector<8x256xf32>
    %221 = arith.mulf %220, %124 : vector<8x256xf32>
    %222 = arith.addf %218, %221 : vector<8x256xf32>
    %c18_76 = arith.constant 18 : index
    %223 = memref.load %arg1[%c18_76] : memref<20xf32, #tpu.memory_space<smem>>
    %224 = vector.broadcast %223 : f32 to vector<8x256xf32>
    %225 = arith.mulf %224, %133 : vector<8x256xf32>
    %226 = arith.addf %222, %225 : vector<8x256xf32>
    %c19_77 = arith.constant 19 : index
    %227 = memref.load %arg1[%c19_77] : memref<20xf32, #tpu.memory_space<smem>>
    %228 = vector.broadcast %227 : f32 to vector<8x256xf32>
    %229 = arith.mulf %228, %136 : vector<8x256xf32>
    %230 = arith.addf %226, %229 : vector<8x256xf32>
    %c3_78 = arith.constant 3 : index
    %231 = memref.load %arg2[%c3_78] : memref<4xf32, #tpu.memory_space<smem>>
    %232 = vector.broadcast %231 : f32 to vector<8x256xf32>
    %233 = arith.addf %230, %232 : vector<8x256xf32>
    %c1_79 = arith.constant 1 : index
    %c3_80 = arith.constant 3 : index
    %c0_81 = arith.constant 0 : index
    %c0_82 = arith.constant 0 : index
    %234 = vector.load %arg3[%c1_79, %c3_80, %c0_81, %c0_82] : memref<2x4x8x256xf32, #tpu.memory_space<vmem>>, vector<1x1x8x256xf32>
    %235 = vector.shape_cast %234 : vector<1x1x8x256xf32> to vector<8x256xf32>
    %236 = vector.shape_cast %233 : vector<8x256xf32> to vector<1x1x8x256xf32>
    tpu.vector_store %arg3[%c1_79, %c3_80, %c0_81, %c0_82], %236 {strides = array<i32>} : memref<2x4x8x256xf32, #tpu.memory_space<vmem>>, vector<1x1x8x256xf32>,
    return
  }
}

</mosaic_0001>

<bundles_post_ra>
// kernel: conv_att_timefilter_forward.1
= control target key start
LH: loop header
LB: loop body
LE: loop exit
PB: predicated region body
PF: predicated region fallthrough
CT: control target
= control target key end

     0   :  { %8 = vsyncpa [#allocation3], 0  ;;  %s948_s0 = inlined_call_operand.hbm [shape: f32[2,1,8,256], index: 0, kind: input, shape index: {}]   ;;  %s949_s1 = inlined_call_operand.vmem [shape: f32[20], index: 1, kind: input, shape index: {}]   ;;  %s950_s2 = inlined_call_operand.vmem [shape: f32[4], index: 2, kind: input, shape index: {}]   ;;  %s951_s3 = inlined_call_operand.hbm [shape: f32[2,4,8,256], index: 3, kind: output, shape index: {}]  }
   0x1   :  { %9 = vsyncpa [#allocation5], 0 }
   0x2   :  { %10 = vsyncpa [#allocation8], 0 }
   0x3   :  { %11 = vsyncpa [#allocation4], 0  ;;  %s562_s12 = smov [#allocation2]   ;;  %s30_s16 = sshll.u32 %s949_s1, 4  ;;  %s31_s16 = int_to_ptr.vmem [resolvable:$true] %s30_s16 }
   0x4   :  { %s17_s13 = sshll.u32 %s562_s12, 4  ;;  %s18_s13 = int_to_ptr.vmem [resolvable:$true] %s17_s13 }
   0x5   :  { %s498_s17 = scalar_lea.vmem %s18_s13, 512  ;;  %p503_p1 = scmp.lt.s32.totalorder %s18_s13, %s18_s13 }
   0x6   :  { %p499_p0 = scmp.ne.s32.totalorder %s18_s13, %s498_s17  ;;  %p504_p2 = scmp.lt.s32.totalorder %s498_s17, %s498_s17 }
   0x8   :  { %p505_p3 = por %p504_p2, %p503_p1 }
   0xa   :  { %p506_p4 = pnand %p505_p3, %p499_p0 }
   0xc   :  { %509 = shalt.err (!%p506_p4)
}
   0xd   :  { %s563_s18 = smov 256   ;;  %s564_s19 = smov 16  }
   0xe   :  { %23 = dma.hbm_to_vmem [thread:$0]  %s948_s0, 512, %s18_s13, [#allocation3], %s563_s18, %s563_s18, %s564_s19  }
   0xf   :  { %s510_s22 = scalar_lea.vmem %s31_s16, 16  ;;  %p515_p6 = scmp.lt.s32.totalorder %s31_s16, %s31_s16 }
  0x10   :  { %p511_p5 = scmp.ne.s32.totalorder %s31_s16, %s510_s22  ;;  %p516_p7 = scmp.lt.s32.totalorder %s510_s22, %s510_s22 }
  0x12   :  { %p517_p8 = por %p516_p7, %p515_p6 }
  0x14   :  { %p518_p9 = pnand %p517_p8, %p511_p5 }
  0x16   :  { %521 = shalt.err (!%p518_p9)
}
  0x17   :  { %s565_s1 = smov [#allocation6]   ;;  %s40_s25 = sshll.u32 %s950_s2, 4  ;;  %s41_s25 = int_to_ptr.vmem [resolvable:$true] %s40_s25 }
  0x18   :  { %33 = dma.vmem_to_smem %s31_s16, 16, %s565_s1, [#allocation5]  }
  0x19   :  { %s522_s26 = scalar_lea.vmem %s41_s25, 16  ;;  %p527_p11 = scmp.lt.s32.totalorder %s41_s25, %s41_s25 }
  0x1a   :  { %p523_p10 = scmp.ne.s32.totalorder %s41_s25, %s522_s26  ;;  %p528_p12 = scmp.lt.s32.totalorder %s522_s26, %s522_s26 }
  0x1c   :  { %p529_p13 = por %p528_p12, %p527_p11 }
  0x1e   :  { %p530_p0 = pnand %p529_p13, %p523_p10 }
  0x20   :  { %533 = shalt.err (!%p530_p0)
}
  0x21   :  { %s566_s0 = smov [#allocation7]  }
  0x22   :  { %43 = dma.vmem_to_smem %s41_s25, 16, %s566_s0, [#allocation8]  }
  0x23   :  { %554 = dma.done.wait [#allocation3], 512  }
  0x24   :  { %555 = vsyncadd [#allocation3], 4294966784 }
  0x25   :  { %556 = dma.done.wait [#allocation5], 16  }
  0x26   :  { %557 = vsyncadd [#allocation5], 4294967280 }
  0x27   :  { %558 = dma.done.wait [#allocation8], 16  }
  0x28   :  { %559 = vsyncadd [#allocation8], 4294967280 }
  0x29   :  { %53 = sfence }
  0x2a   :  { %v604_v0 = vld [vmem:[#allocation2] sm:$0xff]  ;;  %s567_s2 = smov 1   ;;  %s568_s27 = smov 2   ;;  %v608_v1 = vld [vmem:[#allocation2 + $0x8] sm:$0xff]  ;;  %v612_v2 = vld [vmem:[#allocation2 + $0x18] sm:$0xff]  ;;  %v54_v4 = vlaneseq }
  0x2b   :  { %76 = vrot.lane.b32.xlu1 %v604_v0, %s567_s2  ;;  %67 = vrot.lane.b32.xlu0 %v604_v0, %s568_s27  ;;  %v614_v3 = vld [vmem:[#allocation2 + $0x10] sm:$0xff]  ;;  %s569_s28 = smov 127   ;;  %s570_s29 = smov 126  }
  0x2c   :  { %s436_s30 = sld [smem:[#allocation6 + $0x1]]  ;;  %v652_v5 = vand.u32 127, %v54_v4 }
  0x2d   :  { %s441_s4 = sld [smem:[#allocation6 + $0x6]] }
  0x2e   :  { %s628_s5 = sld [smem:[#allocation6 + $0xb]]  ;;  %vm80_vm0 = vcmp.lt.s32.totalorder %v652_v5, 1  ;;  %vm71_vm1 = vcmp.lt.s32.totalorder %v652_v5, 2  ;;  %vm59_vm2 = vcmp.ge.s32.totalorder %v652_v5, 1  ;;  %v672_v10 = vadd.s32 128, %v652_v5 }
  0x2f   :  { %78 = vrot.lane.b32.xlu1 %v608_v1, %s567_s2  ;;  %69 = vrot.lane.b32.xlu0 %v608_v1, %s568_s27  ;;  %s630_s6 = sld [smem:[#allocation6 + $0x10]]  ;;  %vm57_vm3 = vcmp.ge.s32.totalorder %v652_v5, 2  ;;  %vm89_vm4 = vcmp.lt.s32.totalorder %v652_v5, 127  ;;  %vm98_vm6 = vcmp.lt.s32.totalorder %v652_v5, 126 }
  0x30   :  { %s632_s7 = sld [smem:[#allocation6]]  ;;  %vm62_vm5 = vcmp.lt.s32.totalorder %v672_v10, 255  ;;  %vm64_vm7 = vcmp.lt.s32.totalorder %v672_v10, 254 }
  0x31   :  { %s437_s8 = sld [smem:[#allocation6 + $0x2]] }
  0x32   :  { %s634_s9 = sld [smem:[#allocation6 + $0x5]]  ;;  %v666_v7 = vstv %s436_s30 }
  0x33   :  { %247 = vrot.lane.b32.xlu1 %v612_v2, %s568_s27  ;;  %245 = vrot.lane.b32.xlu0 %v614_v3, %s568_s27  ;;  %s442_s10 = sld [smem:[#allocation6 + $0x7]]  ;;  %v668_v8 = vstv %s441_s4 }
  0x34   :  { %s636_s11 = sld [smem:[#allocation6 + $0xa]]  ;;  %v677_v11 = vstv %s628_s5 }
  0x35   :  { %s448_s12 = sld [smem:[#allocation6 + $0xc]]  ;;  %v680_v12 = vstv %s630_s6 }
  0x36   :  { %s638_s13 = sld [smem:[#allocation6 + $0xf]]  ;;  %v683_v13 = vstv %s632_s7 }
  0x37   :  { %255 = vrot.lane.b32.xlu1 %v612_v2, %s567_s2  ;;  %253 = vrot.lane.b32.xlu0 %v614_v3, %s567_s2  ;;  %s640_s14 = sld [smem:[#allocation6 + $0x11]]  ;;  %v114_v6 = vstv %s437_s8  ;;  %s571_s2 = smov [#allocation9]  }
  0x38   :  { %s642_s15 = sld [smem:[#allocation6 + $0x3]]  ;;  %v688_v15 = vmul.f32 %v114_v6, %v608_v1  ;;  %v691_v16 = vstv %s634_s9  ;;  %v695_v17 = vmul.f32 %v612_v2, %v114_v6  ;;  %v698_v18 = vmul.f32 %v114_v6, %v604_v0  ;;  %s422_s27 = sshll.u32 %s571_s2, 4  ;;  %s423_s27 = int_to_ptr.vmem [resolvable:$true] %s422_s27 }
  0x39   :  { %s644_s16 = sld [smem:[#allocation6 + $0x8]]  ;;  %v148_v9 = vstv %s442_s10  ;;  %v717_v25 = vmul.f32 %v614_v3, %v114_v6  ;;  %p539_p2 = scmp.lt.s32.totalorder %s423_s27, %s423_s27 }
  0x3a   :  { %s646_s17 = sld [smem:[#allocation6 + $0xd]]  ;;  %v701_v19 = vmul.f32 %v148_v9, %v608_v1  ;;  %v704_v20 = vstv %s636_s11  ;;  %v708_v22 = vmul.f32 %v612_v2, %v148_v9  ;;  %v714_v24 = vmul.f32 %v148_v9, %v604_v0 }
  0x3b   :  { %87 = vrot.lane.b32.xlu1 %v608_v1, %s569_s28  ;;  %85 = vrot.lane.b32.xlu0 %v604_v0, %s569_s28  ;;  %s648_s20 = sld [smem:[#allocation6 + $0x12]]  ;;  %v183_v14 = vstv %s448_s12  ;;  %v720_v26 = vmul.f32 %v614_v3, %v148_v9 }
  0x3c   :  { %s650_s21 = sld [smem:[#allocation6 + $0x4]]  ;;  %v711_v23 = vmul.f32 %v183_v14, %v608_v1  ;;  %v723_v29 = vstv %s638_s13  ;;  %v726_v30 = vmul.f32 %v612_v2, %v183_v14  ;;  %v729_v31 = vmul.f32 %v183_v14, %v604_v0 }
  0x3d   :  { %s654_s22 = sld [smem:[#allocation7]]  ;;  %v218_v21 = vstv %s640_s14  ;;  %v732_v32 = vmul.f32 %v614_v3, %v183_v14 }
  0x3e   :  { %s656_s1 = sld [smem:[#allocation6 + $0x9]]  ;;  %v220_v33 = vmul.f32 %v218_v21, %v608_v1  ;;  %v736_v34 = vmul.f32 %v612_v2, %v218_v21  ;;  %v739_v35 = vstv %s642_s15  ;;  %v742_v36 = vmul.f32 %v218_v21, %v604_v0 }
  0x3f   :  { %263 = vrot.lane.b32.xlu1 %v612_v2, %s569_s28  ;;  %261 = vrot.lane.b32.xlu0 %v614_v3, %s569_s28  ;;  %s658_s23 = sld [smem:[#allocation7 + $0x1]]  ;;  %v745_v37 = vstv %s644_s16  ;;  %v754_v40 = vmul.f32 %v614_v3, %v218_v21  ;;  %s534_s28 = scalar_lea.vmem %s423_s27, 2048 }
  0x40   :  { %s660_s24 = sld [smem:[#allocation6 + $0xe]]  ;;  %v748_v38 = vstv %s646_s17  ;;  %p535_p1 = scmp.ne.s32.totalorder %s423_s27, %s534_s28 }
  0x41   :  { %s664_s25 = sld [smem:[#allocation7 + $0x2]]  ;;  %v751_v39 = vstv %s648_s20  ;;  %p540_p3 = scmp.lt.s32.totalorder %s534_s28, %s534_s28 }
  0x42   :  { %s674_s26 = sld [smem:[#allocation6 + $0x13]]  ;;  %v757_v41 = vstv %s650_s21 }
  0x43   :  { %96 = vrot.lane.b32.xlu1 %v608_v1, %s570_s29  ;;  %94 = vrot.lane.b32.xlu0 %v604_v0, %s570_s29  ;;  %s685_s0 = sld [smem:[#allocation7 + $0x3]]  ;;  %v760_v42 = vstv %s654_s22  ;;  %p541_p4 = por %p540_p3, %p539_p2 }
  0x44   :  { %956 = vst [vmem:[#allocation14_spill] sm:$0xff] %v760_v42  ;;  %v763_v43 = vstv %s656_s1 }
  0x45   :  { %v766_v44 = vstv %s658_s23  ;;  %p542_p5 = pnand %p541_p4, %p535_p1 }
  0x46   :  { %957 = vst [vmem:[#allocation15_spill] sm:$0xff] %v766_v44  ;;  %v769_v47 = vstv %s660_s24 }
  0x47   :  { %271 = vrot.lane.b32.xlu1 %v612_v2, %s570_s29  ;;  %269 = vrot.lane.b32.xlu0 %v614_v3, %s570_s29  ;;  %v772_v48 = vstv %s664_s25 }
  0x48   :  { %958 = vst [vmem:[#allocation16_spill] sm:$0xff] %v772_v48  ;;  %v775_v49 = vstv %s674_s26 }
  0x49   :  { %v778_v50 = vstv %s685_s0 }
  0x4a   :  { %959 = vst [vmem:[#allocation17_spill] sm:$0xff] %v778_v50 }
  0x9d   :  { %v77_v27 = vpop.permute.xlu1 %76  ;;  %v68_v28 = vpop.permute.xlu0 %67 }
  0xa1   :  { %v79_v45 = vpop.permute.xlu1 %78  ;;  %v70_v46 = vpop.permute.xlu0 %69 }
  0xa2   :  { %v81_v51 = vsel %vm80_vm0, %v77_v27, %v79_v45  ;;  %v82_v52 = vsel %vm80_vm0, %v79_v45, %v77_v27  ;;  %v72_v53 = vsel %vm71_vm1, %v68_v28, %v70_v46  ;;  %v73_v54 = vsel %vm71_vm1, %v70_v46, %v68_v28 }
  0xa3   :  { %v83_v55 = vsel %vm59_vm2, %v82_v52, 0.0  ;;  %v110_v56 = vmul.f32 %v666_v7, %v81_v51  ;;  %v144_v57 = vmul.f32 %v668_v8, %v81_v51  ;;  %v179_v58 = vmul.f32 %v677_v11, %v81_v51 }
  0xa4   :  { %v109_v59 = vmul.f32 %v666_v7, %v83_v55  ;;  %v143_v60 = vmul.f32 %v668_v8, %v83_v55  ;;  %v178_v61 = vmul.f32 %v677_v11, %v83_v55  ;;  %v213_v62 = vmul.f32 %v680_v12, %v83_v55 }
  0xa5   :  { %v214_v63 = vmul.f32 %v680_v12, %v81_v51  ;;  %v74_v0 = vsel %vm57_vm3, %v73_v54, 0.0  ;;  %v106_v1 = vmul.f32 %v683_v13, %v72_v53  ;;  %v140_v2 = vmul.f32 %v691_v16, %v72_v53  ;;  %v248_v3 = vpop.permute.xlu1 %247  ;;  %v246_v4 = vpop.permute.xlu0 %245 }
  0xa6   :  { %v105_v6 = vmul.f32 %v683_v13, %v74_v0  ;;  %v139_v9 = vmul.f32 %v691_v16, %v74_v0  ;;  %v174_v14 = vmul.f32 %v704_v20, %v74_v0  ;;  %v175_v21 = vmul.f32 %v704_v20, %v72_v53 }
  0xa7   :  { %v112_v27 = vadd.f32 %v110_v56, %v106_v1  ;;  %v146_v28 = vadd.f32 %v144_v57, %v140_v2  ;;  %v209_v45 = vmul.f32 %v723_v29, %v74_v0  ;;  %v210_v46 = vmul.f32 %v723_v29, %v72_v53 }
  0xa8   :  { %v111_v51 = vadd.f32 %v109_v59, %v105_v6  ;;  %v145_v52 = vadd.f32 %v143_v60, %v139_v9  ;;  %v180_v54 = vadd.f32 %v178_v61, %v174_v14  ;;  %v181_v55 = vadd.f32 %v179_v58, %v175_v21 }
  0xa9   :  { %v810_v50 = vadd.f32 %v688_v15, %v112_v27  ;;  %v813_v48 = vadd.f32 %v701_v19, %v146_v28  ;;  %v815_v44 = vadd.f32 %v213_v62, %v209_v45  ;;  %v216_v56 = vadd.f32 %v214_v63, %v210_v46  ;;  %v256_v57 = vpop.permute.xlu1 %255  ;;  %v254_v1 = vpop.permute.xlu0 %253 }
  0xaa   :  { %v819_v53 = vadd.f32 %v711_v23, %v181_v55  ;;  %v249_v58 = vsel %vm71_vm1, %v246_v4, %v248_v3  ;;  %v250_v15 = vsel %vm71_vm1, %v248_v3, %v246_v4  ;;  %v257_v19 = vsel %vm80_vm0, %v254_v1, %v256_v57 }
  0xab   :  { %v827_v59 = vadd.f32 %v220_v33, %v216_v56  ;;  %v251_v60 = vsel %vm57_vm3, %v250_v15, 0.0  ;;  %v280_v61 = vmul.f32 %v249_v58, %v683_v13  ;;  %v315_v62 = vmul.f32 %v249_v58, %v691_v16 }
  0xac   :  { %v279_v23 = vmul.f32 %v251_v60, %v683_v13  ;;  %v314_v63 = vmul.f32 %v251_v60, %v691_v16  ;;  %v349_v0 = vmul.f32 %v251_v60, %v704_v20  ;;  %v350_v2 = vmul.f32 %v249_v58, %v704_v20 }
  0xad   :  { %v384_v3 = vmul.f32 %v251_v60, %v723_v29  ;;  %v385_v33 = vmul.f32 %v249_v58, %v723_v29  ;;  %v258_v4 = vsel %vm80_vm0, %v256_v57, %v254_v1  ;;  %v284_v6 = vmul.f32 %v257_v19, %v666_v7  ;;  %v88_v9 = vpop.permute.xlu1 %87  ;;  %v86_v14 = vpop.permute.xlu0 %85 }
  0xae   :  { %v259_v13 = vsel %vm59_vm2, %v258_v4, 0.0  ;;  %v319_v16 = vmul.f32 %v257_v19, %v668_v8  ;;  %v354_v21 = vmul.f32 %v257_v19, %v677_v11  ;;  %v389_v20 = vmul.f32 %v257_v19, %v680_v12 }
  0xaf   :  { %v283_v27 = vmul.f32 %v259_v13, %v666_v7  ;;  %v286_v28 = vadd.f32 %v284_v6, %v280_v61  ;;  %v318_v29 = vmul.f32 %v259_v13, %v668_v8  ;;  %v353_v45 = vmul.f32 %v259_v13, %v677_v11 }
  0xb0   :  { %v321_v46 = vadd.f32 %v319_v16, %v315_v62  ;;  %v356_v55 = vadd.f32 %v354_v21, %v350_v2  ;;  %v388_v56 = vmul.f32 %v259_v13, %v680_v12  ;;  %v391_v57 = vadd.f32 %v389_v20, %v385_v33 }
  0xb1   :  { %v285_v1 = vadd.f32 %v283_v27, %v279_v23  ;;  %v292_v58 = vadd.f32 %v695_v17, %v286_v28  ;;  %v320_v15 = vadd.f32 %v318_v29, %v314_v63  ;;  %v355_v60 = vadd.f32 %v353_v45, %v349_v0  ;;  %v264_v4 = vpop.permute.xlu1 %263  ;;  %v262_v42 = vpop.permute.xlu0 %261 }
  0xb2   :  { %v327_v19 = vadd.f32 %v708_v22, %v321_v46  ;;  %v362_v7 = vadd.f32 %v726_v30, %v356_v55  ;;  %v390_v61 = vadd.f32 %v388_v56, %v384_v3  ;;  %v397_v8 = vadd.f32 %v736_v34, %v391_v57 }
  0xb3   :  { %v90_v11 = vsel %vm89_vm4, %v86_v14, %v88_v9  ;;  %v91_v12 = vsel %vm89_vm4, %v88_v9, %v86_v14  ;;  %v117_v62 = vadd.f32 %v698_v18, %v111_v51  ;;  %v151_v17 = vadd.f32 %v714_v24, %v145_v52 }
  0xb4   :  { %v93_v22 = vsel %vm62_vm5, %v91_v12, 0.0  ;;  %v121_v30 = vmul.f32 %v739_v35, %v90_v11  ;;  %v155_v23 = vmul.f32 %v745_v37, %v90_v11  ;;  %v186_v34 = vadd.f32 %v729_v31, %v180_v54 }
  0xb5   :  { %v122_v63 = vmul.f32 %v739_v35, %v93_v22  ;;  %v156_v0 = vmul.f32 %v745_v37, %v93_v22  ;;  %v190_v18 = vmul.f32 %v748_v38, %v90_v11  ;;  %v191_v24 = vmul.f32 %v748_v38, %v93_v22  ;;  %v97_v51 = vpop.permute.xlu1 %96  ;;  %v95_v52 = vpop.permute.xlu0 %94 }
  0xb6   :  { %v123_v2 = vadd.f32 %v121_v30, %v117_v62  ;;  %v157_v3 = vadd.f32 %v155_v23, %v151_v17  ;;  %v221_v33 = vadd.f32 %v742_v36, %v815_v44  ;;  %v225_v6 = vmul.f32 %v751_v39, %v90_v11 }
  0xb7   :  { %v124_v31 = vadd.f32 %v122_v63, %v810_v50  ;;  %v158_v54 = vadd.f32 %v156_v0, %v813_v48  ;;  %v192_v9 = vadd.f32 %v190_v18, %v186_v34  ;;  %v193_v14 = vadd.f32 %v191_v24, %v819_v53  ;;  %v960_v0 = vld [vmem:[#allocation14_spill] sm:$0xff] }
  0xb8   :  { %v226_v13 = vmul.f32 %v751_v39, %v93_v22  ;;  %v227_v16 = vadd.f32 %v225_v6, %v221_v33  ;;  %v265_v21 = vsel %vm89_vm4, %v262_v42, %v264_v4  ;;  %v266_v20 = vsel %vm89_vm4, %v264_v4, %v262_v42  ;;  %v961_v6 = vld [vmem:[#allocation15_spill] sm:$0xff] }
  0xb9   :  { %v268_v36 = vsel %vm62_vm5, %v266_v20, 0.0  ;;  %v291_v44 = vadd.f32 %v717_v25, %v285_v1  ;;  %v295_v50 = vmul.f32 %v265_v21, %v739_v35  ;;  %v326_v48 = vadd.f32 %v720_v26, %v320_v15  ;;  %v272_v25 = vpop.permute.xlu1 %271  ;;  %v270_v56 = vpop.permute.xlu0 %269 }
  0xba   :  { %v228_v53 = vadd.f32 %v226_v13, %v827_v59  ;;  %v296_v27 = vmul.f32 %v268_v36, %v739_v35  ;;  %v330_v28 = vmul.f32 %v265_v21, %v745_v37  ;;  %v331_v29 = vmul.f32 %v268_v36, %v745_v37 }
  0xbb   :  { %v297_v45 = vadd.f32 %v295_v50, %v291_v44  ;;  %v361_v42 = vadd.f32 %v732_v32, %v355_v60  ;;  %v365_v46 = vmul.f32 %v265_v21, %v748_v38  ;;  %v366_v55 = vmul.f32 %v268_v36, %v748_v38 }
  0xbc   :  { %v298_v57 = vadd.f32 %v296_v27, %v292_v58  ;;  %v332_v1 = vadd.f32 %v330_v28, %v326_v48  ;;  %v333_v26 = vadd.f32 %v331_v29, %v327_v19  ;;  %v396_v59 = vadd.f32 %v754_v40, %v390_v61 }
  0xbd   :  { %v367_v15 = vadd.f32 %v365_v46, %v361_v42  ;;  %v368_v35 = vadd.f32 %v366_v55, %v362_v7  ;;  %v400_v4 = vmul.f32 %v265_v21, %v751_v39  ;;  %v401_v37 = vmul.f32 %v268_v36, %v751_v39  ;;  %v962_v21 = vld [vmem:[#allocation16_spill] sm:$0xff] }
  0xbe   :  { %v99_v32 = vsel %vm98_vm6, %v95_v52, %v97_v51  ;;  %v100_v60 = vsel %vm98_vm6, %v97_v51, %v95_v52  ;;  %v273_v38 = vsel %vm98_vm6, %v270_v56, %v272_v25  ;;  %v274_v58 = vsel %vm98_vm6, %v272_v25, %v270_v56 }
  0xbf   :  { %v402_v19 = vadd.f32 %v400_v4, %v396_v59  ;;  %v403_v40 = vadd.f32 %v401_v37, %v397_v8  ;;  %v102_v7 = vsel %vm64_vm7, %v100_v60, 0.0  ;;  %v127_v61 = vmul.f32 %v757_v41, %v99_v32 }
  0xc0   :  { %v128_v39 = vmul.f32 %v757_v41, %v102_v7  ;;  %v161_v11 = vmul.f32 %v763_v43, %v99_v32  ;;  %v162_v12 = vmul.f32 %v763_v43, %v102_v7  ;;  %v196_v62 = vmul.f32 %v769_v47, %v99_v32 }
  0xc1   :  { %v129_v17 = vadd.f32 %v127_v61, %v123_v2  ;;  %v197_v22 = vmul.f32 %v769_v47, %v102_v7  ;;  %v231_v5 = vmul.f32 %v775_v49, %v99_v32  ;;  %v232_v8 = vmul.f32 %v775_v49, %v102_v7 }
  0xc2   :  { %v130_v30 = vadd.f32 %v128_v39, %v124_v31  ;;  %v163_v23 = vadd.f32 %v161_v11, %v157_v3  ;;  %v164_v34 = vadd.f32 %v162_v12, %v158_v54  ;;  %v198_v63 = vadd.f32 %v196_v62, %v192_v9  ;;  %v963_v31 = vld [vmem:[#allocation17_spill] sm:$0xff] }
  0xc3   :  { %v133_v18 = vadd.f32 %v960_v0, %v129_v17  ;;  %v199_v24 = vadd.f32 %v197_v22, %v193_v14  ;;  %v233_v51 = vadd.f32 %v231_v5, %v227_v16  ;;  %v234_v52 = vadd.f32 %v232_v8, %v228_v53 }
  0xc4   :  { %v134_v33 = vadd.f32 %v960_v0, %v130_v30  ;;  %v167_v13 = vadd.f32 %v961_v6, %v163_v23  ;;  %v168_v2 = vadd.f32 %v961_v6, %v164_v34  ;;  %v202_v20 = vadd.f32 %v962_v21, %v198_v63 }
  0xc5   :  { %135 = vst [vmem:[#allocation9] sm:$0xff] %v133_v18  ;;  %v203_v36 = vadd.f32 %v962_v21, %v199_v24  ;;  %v237_v3 = vadd.f32 %v963_v31, %v233_v51  ;;  %v238_v54 = vadd.f32 %v963_v31, %v234_v52  ;;  %v276_v9 = vsel %vm64_vm7, %v274_v58, 0.0 }
  0xc6   :  { %136 = vst [vmem:[#allocation9 + $0x8] sm:$0xff] %v134_v33  ;;  %170 = vst [vmem:[#allocation9 + $0x10] sm:$0xff] %v167_v13  ;;  %v301_v14 = vmul.f32 %v273_v38, %v757_v41  ;;  %v302_v16 = vmul.f32 %v276_v9, %v757_v41  ;;  %v336_v44 = vmul.f32 %v273_v38, %v763_v43 }
  0xc7   :  { %171 = vst [vmem:[#allocation9 + $0x18] sm:$0xff] %v168_v2  ;;  %205 = vst [vmem:[#allocation9 + $0x20] sm:$0xff] %v202_v20  ;;  %v337_v50 = vmul.f32 %v276_v9, %v763_v43  ;;  %v371_v48 = vmul.f32 %v273_v38, %v769_v47  ;;  %v372_v10 = vmul.f32 %v276_v9, %v769_v47 }
  0xc8   :  { %206 = vst [vmem:[#allocation9 + $0x28] sm:$0xff] %v203_v36  ;;  %240 = vst [vmem:[#allocation9 + $0x30] sm:$0xff] %v237_v3  ;;  %v406_v53 = vmul.f32 %v273_v38, %v775_v49  ;;  %v407_v27 = vmul.f32 %v276_v9, %v775_v49  ;;  %v303_v28 = vadd.f32 %v301_v14, %v297_v45 }
  0xc9   :  { %241 = vst [vmem:[#allocation9 + $0x38] sm:$0xff] %v238_v54  ;;  %v304_v29 = vadd.f32 %v302_v16, %v298_v57  ;;  %v338_v42 = vadd.f32 %v336_v44, %v332_v1  ;;  %v339_v46 = vadd.f32 %v337_v50, %v333_v26  ;;  %v373_v41 = vadd.f32 %v371_v48, %v367_v15 }
  0xca   :  { %v374_v55 = vadd.f32 %v372_v10, %v368_v35  ;;  %v408_v43 = vadd.f32 %v406_v53, %v402_v19  ;;  %v409_v25 = vadd.f32 %v407_v27, %v403_v40  ;;  %v307_v56 = vadd.f32 %v303_v28, %v960_v0 }
  0xcb   :  { %v308_v59 = vadd.f32 %v304_v29, %v960_v0  ;;  %v342_v47 = vadd.f32 %v338_v42, %v961_v6  ;;  %v343_v4 = vadd.f32 %v339_v46, %v961_v6  ;;  %v377_v49 = vadd.f32 %v373_v41, %v962_v21 }
  0xcc   :  { %v378_v45 = vadd.f32 %v374_v55, %v962_v21  ;;  %v412_v57 = vadd.f32 %v408_v43, %v963_v31  ;;  %v413_v1 = vadd.f32 %v409_v25, %v963_v31  ;;  %310 = vst [vmem:[#allocation9 + $0x40] sm:$0xff] %v307_v56 }
  0xcd   :  { %311 = vst [vmem:[#allocation9 + $0x48] sm:$0xff] %v308_v59  ;;  %345 = vst [vmem:[#allocation9 + $0x50] sm:$0xff] %v342_v47 }
  0xce   :  { %346 = vst [vmem:[#allocation9 + $0x58] sm:$0xff] %v343_v4  ;;  %380 = vst [vmem:[#allocation9 + $0x60] sm:$0xff] %v377_v49 }
  0xcf   :  { %381 = vst [vmem:[#allocation9 + $0x68] sm:$0xff] %v378_v45  ;;  %415 = vst [vmem:[#allocation9 + $0x70] sm:$0xff] %v412_v57 }
  0xd0   :  { %416 = vst [vmem:[#allocation9 + $0x78] sm:$0xff] %v413_v1 }
  0xd1   :  { %545 = shalt.err (!%p542_p5)
}
  0xd2   :  { %428 = dma.vmem_to_hbm [thread:$0]  %s423_s27, 2048, %s951_s3, [#allocation4], %s563_s18, %s563_s18, %s564_s19  }
  0xd3   :  { %560 = dma.done.wait [#allocation4], 2048  }
  0xd4   :  { %561 = vsyncadd [#allocation4], 4294965248 }
  0xd5   :  { %432 = vsyncpa [#allocation3], 1 }
  0xd6   :  { %433 = vsyncpa [#allocation4], 1 }
  0xd7   :  { %434 = vsyncpa [#allocation5], 1 }
  0xd8   :  { %435 = vsyncpa [#allocation8], 1 }

</bundles_post_ra>
